<compile_context>
chip_gen: v7x
topology: tpu7x:2x2x1
jax: 0.10.0
libtpu: 0.0.40
codegen_flags: <defaults>
</compile_context>

<pallas_src>
import functools

import jax
import jax.numpy as jnp
from jax.experimental import pallas as pl
from jax.experimental.pallas import tpu as pltpu

LANE = 128
MAX_TILE_ROWS = 8192  # 8192 * 128 * 4 B = 4 MiB per f32 input tile


def _focal_sum_kernel(p_ref, t_ref, o_ref, *, gamma, alpha, block_rows):
    i = pl.program_id(1)

    @pl.when(i == 0)
    def _():
        o_ref[...] = jnp.zeros_like(o_ref)

    x = p_ref[...].astype(jnp.float32)
    t = t_ref[...].astype(jnp.float32)

    # Stable sigmoid + BCE-with-logits from a single exp:  e = exp(-|x|).
    e = jnp.exp(-jnp.abs(x))
    one_p_e = 1.0 + e
    inv = pl.reciprocal(one_p_e, approx=True)          # EUP, not a VALU divide
    p = jnp.where(x >= 0.0, inv, e * inv)              # sigmoid(x)
    ce = jnp.maximum(x, 0.0) - x * t + jnp.log(one_p_e)
    one_m = p + t - 2.0 * (p * t)                      # == 1 - p_t   (folded)
    if gamma == 2.0:                                   # default: pure VPU
        mod = one_m * one_m
    elif gamma == 1.0:
        mod = one_m
    elif gamma == 0.0:
        mod = None
    else:
        mod = one_m ** gamma
    alpha_t = (1.0 - alpha) + (2.0 * alpha - 1.0) * t  # folded alpha_t
    loss = alpha_t * ce
    if mod is not None:
        loss = loss * mod

    # (block_rows, 128) -> (block_rows//8, 8, 128); summing the leading axis is
    # plain vreg adds into the lane-wide, VMEM-resident output accumulator.
    o_ref[...] += jnp.sum(loss.reshape(block_rows // 8, 8, LANE), axis=0)


def _round_up(x, m):
    return (x + m - 1) // m * m


def _tensorcores_per_device():
    """2 on multi-TensorCore chips (v4/v5p/v7x), 1 otherwise (v5e/v6e)."""
    try:
        kind = jax.devices()[0].device_kind.lower()
    except Exception:
        return 1
    if "lite" in kind or "v5e" in kind or "v6e" in kind:
        return 1
    if "v7" in kind or "v5p" in kind or "v4" in kind:
        return 2
    return 1


def _focal_elementwise(x, t, gamma, alpha):
    """Per-element sigmoid focal loss (plain JAX; used for the ragged tail)."""
    x = x.astype(jnp.float32)
    t = t.astype(jnp.float32)
    e = jnp.exp(-jnp.abs(x))
    inv = 1.0 / (1.0 + e)
    p = jnp.where(x >= 0.0, inv, e * inv)
    ce = jnp.maximum(x, 0.0) - x * t + jnp.log1p(e)
    one_m = p + t - 2.0 * (p * t)
    alpha_t = (1.0 - alpha) + (2.0 * alpha - 1.0) * t
    return alpha_t * ce * (one_m ** gamma)


def focal_loss(preds, targets, gamma=2.0, alpha=0.25, size_average=True,
               loss_weight=1.0):
    assert preds.shape == targets.shape
    gamma = float(gamma)
    alpha = float(alpha)
    n_elems = preds.size

    flat_p = preds.reshape(-1)
    flat_t = targets.reshape(-1)        # keep caller dtype (bf16/int8 OK)

    # Sublane multiple for the narrowest streamed dtype (f32->8, bf16->16, i8->32).
    mult = max(8, 32 // min(preds.dtype.itemsize, targets.dtype.itemsize))

    rows_kernel_max = (n_elems // LANE) // mult * mult  # rows the kernel may own
    num_cores = _tensorcores_per_device()
    if rows_kernel_max < num_cores * mult:
        num_cores = 1

    if rows_kernel_max == 0:
        kernel_sum = jnp.zeros((), jnp.float32)
        n_kernel = 0
    else:
        steps_total = max(1, -(-rows_kernel_max // MAX_TILE_ROWS))
        steps_total = _round_up(steps_total, num_cores)
        block_rows = (rows_kernel_max // steps_total) // mult * mult
        rows = block_rows * steps_total
        steps_per_core = steps_total // num_cores
        n_kernel = rows * LANE

        p2 = (flat_p if n_kernel == n_elems else flat_p[:n_kernel]).reshape(rows, LANE)
        t2 = (flat_t if n_kernel == n_elems else flat_t[:n_kernel]).reshape(rows, LANE)

        kernel = functools.partial(_focal_sum_kernel, gamma=gamma, alpha=alpha,
                                   block_rows=block_rows)
        in_spec = pl.BlockSpec((block_rows, LANE),
                               lambda c, i: (c * steps_per_core + i, 0))

        partials = pl.pallas_call(
            kernel,
            out_shape=jax.ShapeDtypeStruct((num_cores, 8, LANE), jnp.float32),
            grid_spec=pltpu.PrefetchScalarGridSpec(
                num_scalar_prefetch=0,
                grid=(num_cores, steps_per_core),
                in_specs=[in_spec, in_spec],
                # Output block index is constant along the reduction axis i,
                # so it stays VMEM-resident and acts as the accumulator.
                out_specs=pl.BlockSpec((None, 8, LANE), lambda c, i: (c, 0, 0)),
            ),
            compiler_params=pltpu.CompilerParams(
                dimension_semantics=("parallel", "arbitrary"),
                vmem_limit_bytes=32 * 1024 * 1024),
        )(p2, t2)
        kernel_sum = jnp.sum(partials)  # single tiny cross-lane reduce

    if n_kernel < n_elems:              # ragged tail (< one tile): plain JAX
        tail = _focal_elementwise(flat_p[n_kernel:], flat_t[n_kernel:], gamma, alpha)
        total = kernel_sum + jnp.sum(tail)
    else:
        total = kernel_sum

    loss = total / n_elems if size_average else total
    return loss_weight * loss


def focal_loss_ref(preds, targets, gamma=2.0, alpha=0.25, size_average=True,
                   loss_weight=1.0):
    x = preds.astype(jnp.float32)
    t = targets.astype(jnp.float32)
    p = jax.nn.sigmoid(x)
    ce = jnp.maximum(x, 0.0) - x * t + jnp.log1p(jnp.exp(-jnp.abs(x)))
    p_t = p * t + (1.0 - p) * (1.0 - t)
    loss = ce * (1.0 - p_t) ** gamma
    alpha_t = alpha * t + (1.0 - alpha) * (1.0 - t)
    loss = alpha_t * loss
    loss = loss.mean() if size_average else loss.sum()
    return loss_weight * loss


if __name__ == "__main__":
    key = jax.random.PRNGKey(0)
    k1, k2 = jax.random.split(key)
    # NCHW inputs, as a detection head would produce: (B, C, H, W)
    shape = (2, 4, 16, 16)
    preds = jax.random.normal(k1, shape, dtype=jnp.float32)
    targets = (jax.random.uniform(k2, shape) > 0.7).astype(jnp.float32)

    out = focal_loss(preds, targets, gamma=2.0, alpha=0.25,
                     size_average=True, loss_weight=1.0)
    out = jax.block_until_ready(out)
    ref = focal_loss_ref(preds, targets)
    # rtol loosened (per review) to cover pl.reciprocal(approx=True).
    assert jnp.allclose(out, ref, rtol=5e-3, atol=1e-6), (out, ref)

    # Ragged shape: exercises kernel prefix + plain-JAX tail epilogue.
    k3, k4 = jax.random.split(k2)
    rshape = (3, 5, 7, 11)                                # 1155 elements
    rpreds = jax.random.normal(k3, rshape, dtype=jnp.float32)
    rtargets = (jax.random.uniform(k4, rshape) > 0.7).astype(jnp.float32)
    rout = jax.block_until_ready(focal_loss(rpreds, rtargets, size_average=False))
    rref = focal_loss_ref(rpreds, rtargets, size_average=False)
    assert jnp.allclose(rout, rref, rtol=5e-3, atol=1e-6), (rout, rref)

    print("KERNEL_OK")
</pallas_src>

<mosaic_0001>
module attributes {stable_mosaic.version = 11 : i64} {
  func.func @_focal_sum_kernel(%arg0: i32, %arg1: i32, %arg2: memref<16x128xf32, #tpu.memory_space<vmem>>, %arg3: memref<16x128xf32, #tpu.memory_space<vmem>>, %arg4: memref<1x8x128xf32, #tpu.memory_space<vmem>>) attributes {dimension_semantics = [#tpu.dimension_semantics<parallel>, #tpu.dimension_semantics<arbitrary>], iteration_bounds = array<i64: 1, 1>, scalar_prefetch = 0 : i64, scratch_operands = 0 : i64, tpu.core_type = #tpu.core_type<tc>, window_params = [{transform_indices = @transform_0, window_bounds = array<i64: 16, 128>}, {transform_indices = @transform_1, window_bounds = array<i64: 16, 128>}, {transform_indices = @transform_2, window_bounds = array<i64: 1, 8, 128>}]} {
    %c0_i32 = arith.constant 0 : i32
    %0 = arith.cmpi eq, %arg1, %c0_i32 : i32
    %1 = arith.extui %0 : i1 to i32
    %c0_i32_0 = arith.constant 0 : i32
    %2 = arith.cmpi ne, %1, %c0_i32_0 : i32
    scf.if %2 {
      %cst_17 = arith.constant 0.000000e+00 : f32
      %42 = vector.broadcast %cst_17 : f32 to vector<8x128xf32>
      %c0_18 = arith.constant 0 : index
      %c0_19 = arith.constant 0 : index
      %c0_20 = arith.constant 0 : index
      %43 = vector.load %arg4[%c0_18, %c0_19, %c0_20] : memref<1x8x128xf32, #tpu.memory_space<vmem>>, vector<1x8x128xf32>
      %44 = vector.shape_cast %43 : vector<1x8x128xf32> to vector<8x128xf32>
      %45 = vector.shape_cast %42 : vector<8x128xf32> to vector<1x8x128xf32>
      tpu.vector_store %arg4[%c0_18, %c0_19, %c0_20], %45 {strides = array<i32>} : memref<1x8x128xf32, #tpu.memory_space<vmem>>, vector<1x8x128xf32>,
    } else {
    }
    %c0 = arith.constant 0 : index
    %c0_1 = arith.constant 0 : index
    %3 = vector.load %arg2[%c0, %c0_1] : memref<16x128xf32, #tpu.memory_space<vmem>>, vector<16x128xf32>
    %c0_2 = arith.constant 0 : index
    %c0_3 = arith.constant 0 : index
    %4 = vector.load %arg3[%c0_2, %c0_3] : memref<16x128xf32, #tpu.memory_space<vmem>>, vector<16x128xf32>
    %5 = math.absf %3 : vector<16x128xf32>
    %cst = arith.constant 0.000000e+00 : f32
    %6 = vector.broadcast %cst : f32 to vector<16x128xf32>
    %7 = arith.subf %6, %5 : vector<16x128xf32>
    %8 = math.exp %7 : vector<16x128xf32>
    %cst_4 = arith.constant 1.000000e+00 : f32
    %9 = vector.broadcast %cst_4 : f32 to vector<16x128xf32>
    %10 = arith.addf %9, %8 : vector<16x128xf32>
    %11 = tpu.reciprocal %10 {approx = true} : vector<16x128xf32> -> vector<16x128xf32>
    %cst_5 = arith.constant 0.000000e+00 : f32
    %12 = vector.broadcast %cst_5 : f32 to vector<16x128xf32>
    %13 = arith.cmpf oge, %3, %12 : vector<16x128xf32>
    %14 = arith.mulf %8, %11 : vector<16x128xf32>
    %15 = arith.select %13, %11, %14 : vector<16x128xi1>, vector<16x128xf32>
    %cst_6 = arith.constant 0.000000e+00 : f32
    %16 = vector.broadcast %cst_6 : f32 to vector<16x128xf32>
    %17 = arith.maximumf %3, %16 : vector<16x128xf32>
    %18 = arith.mulf %3, %4 : vector<16x128xf32>
    %19 = arith.subf %17, %18 : vector<16x128xf32>
    %20 = math.log %10 : vector<16x128xf32>
    %21 = arith.addf %19, %20 : vector<16x128xf32>
    %22 = arith.addf %15, %4 : vector<16x128xf32>
    %23 = arith.mulf %15, %4 : vector<16x128xf32>
    %cst_7 = arith.constant 2.000000e+00 : f32
    %24 = vector.broadcast %cst_7 : f32 to vector<16x128xf32>
    %25 = arith.mulf %24, %23 : vector<16x128xf32>
    %26 = arith.subf %22, %25 : vector<16x128xf32>
    %27 = arith.mulf %26, %26 : vector<16x128xf32>
    %cst_8 = arith.constant -5.000000e-01 : f32
    %28 = vector.broadcast %cst_8 : f32 to vector<16x128xf32>
    %29 = arith.mulf %28, %4 : vector<16x128xf32>
    %cst_9 = arith.constant 7.500000e-01 : f32
    %30 = vector.broadcast %cst_9 : f32 to vector<16x128xf32>
    %31 = arith.addf %30, %29 : vector<16x128xf32>
    %32 = arith.mulf %31, %21 : vector<16x128xf32>
    %33 = arith.mulf %32, %27 : vector<16x128xf32>
    %c0_10 = arith.constant 0 : index
    %c0_11 = arith.constant 0 : index
    %c0_12 = arith.constant 0 : index
    %34 = vector.load %arg4[%c0_10, %c0_11, %c0_12] : memref<1x8x128xf32, #tpu.memory_space<vmem>>, vector<1x8x128xf32>
    %35 = vector.shape_cast %34 : vector<1x8x128xf32> to vector<8x128xf32>
    %36 = vector.shape_cast %33 : vector<16x128xf32> to vector<2x8x128xf32>
    %cst_13 = arith.constant dense<0.000000e+00> : vector<8x128xf32>
    %37 = vector.multi_reduction <add>, %36, %cst_13 [0] : vector<2x8x128xf32> to vector<8x128xf32>
    %38 = arith.addf %35, %37 : vector<8x128xf32>
    %c0_14 = arith.constant 0 : index
    %c0_15 = arith.constant 0 : index
    %c0_16 = arith.constant 0 : index
    %39 = vector.load %arg4[%c0_14, %c0_15, %c0_16] : memref<1x8x128xf32, #tpu.memory_space<vmem>>, vector<1x8x128xf32>
    %40 = vector.shape_cast %39 : vector<1x8x128xf32> to vector<8x128xf32>
    %41 = vector.shape_cast %38 : vector<8x128xf32> to vector<1x8x128xf32>
    tpu.vector_store %arg4[%c0_14, %c0_15, %c0_16], %41 {strides = array<i32>} : memref<1x8x128xf32, #tpu.memory_space<vmem>>, vector<1x8x128xf32>,
    return
  }
  func.func @transform_0(%arg0: i32, %arg1: i32) -> (i32, i32) {
    %c1_i32 = arith.constant 1 : i32
    %0 = arith.muli %arg0, %c1_i32 : i32
    %1 = arith.addi %0, %arg1 : i32
    %c0_i32 = arith.constant 0 : i32
    %c0_i32_0 = arith.constant 0 : i32
    return %1, %c0_i32 : i32, i32
  }
  func.func @transform_1(%arg0: i32, %arg1: i32) -> (i32, i32) {
    %c1_i32 = arith.constant 1 : i32
    %0 = arith.muli %arg0, %c1_i32 : i32
    %1 = arith.addi %0, %arg1 : i32
    %c0_i32 = arith.constant 0 : i32
    %c0_i32_0 = arith.constant 0 : i32
    return %1, %c0_i32 : i32, i32
  }
  func.func @transform_2(%arg0: i32, %arg1: i32) -> (i32, i32, i32) {
    %c0_i32 = arith.constant 0 : i32
    %c0_i32_0 = arith.constant 0 : i32
    %c0_i32_1 = arith.constant 0 : i32
    return %arg0, %c0_i32, %c0_i32_0 : i32, i32, i32
  }
}

</mosaic_0001>

<bundles_post_ra>
// kernel: tpu_custom_call.1
= control target key start
LH: loop header
LB: loop body
LE: loop exit
PB: predicated region body
PF: predicated region fallthrough
CT: control target
= control target key end

     0   :  { %7 = vsyncpa [#allocation3], 0  ;;  %s275_s0 = inlined_call_operand.hbm [shape: f32[16,128], index: 0, kind: input, shape index: {}]   ;;  %s276_s1 = inlined_call_operand.hbm [shape: f32[16,128], index: 1, kind: input, shape index: {}]   ;;  %s277_s2 = inlined_call_operand.hbm [shape: f32[1,8,128], index: 2, kind: output, shape index: {}]  }
   0x1   :  { %8 = vsyncpa [#allocation6], 0 }
   0x2   :  { %9 = vsyncpa [#allocation4], 0  ;;  %s219_s9 = smov [#allocation2]   ;;  %s147_s13 = scalar_lea.hbm %s275_s0, 256 }
   0x3   :  { %s19_s10 = sshll.u32 %s219_s9, 4  ;;  %p148_p0 = scmp.ne.s32.totalorder %s275_s0, %s147_s13  ;;  %s20_s10 = int_to_ptr.vmem [resolvable:$true] %s19_s10 }
   0x4   :  { %p151_p1 = scmp.lt.u32.totalorder %s147_s13, %s275_s0 }
   0x6   :  { %p153_p2 = pnand %p151_p1, %p148_p0 }
   0x8   :  { %156 = shalt.err (!%p153_p2)
}
   0x9   :  { %s157_s18 = scalar_lea.vmem %s20_s10, 256  ;;  %p162_p4 = scmp.lt.s32.totalorder %s20_s10, %s20_s10 }
   0xa   :  { %p158_p3 = scmp.ne.s32.totalorder %s20_s10, %s157_s18  ;;  %p163_p5 = scmp.lt.s32.totalorder %s157_s18, %s157_s18 }
   0xc   :  { %p164_p6 = por %p163_p5, %p162_p4 }
   0xe   :  { %p165_p7 = pnand %p164_p6, %p158_p3 }
  0x10   :  { %168 = shalt.err (!%p165_p7)
}
  0x11   :  { %s220_s19 = smov 128   ;;  %s221_s20 = smov 8  }
  0x12   :  { %25 = dma.hbm_to_vmem [thread:$0]  %s275_s0, 256, %s20_s10, [#allocation3], %s220_s19, %s220_s19, %s221_s20  }
  0x13   :  { %s222_s23 = smov [#allocation5]   ;;  %s169_s27 = scalar_lea.hbm %s276_s1, 256 }
  0x14   :  { %s35_s24 = sshll.u32 %s222_s23, 4  ;;  %p170_p8 = scmp.ne.s32.totalorder %s276_s1, %s169_s27  ;;  %s36_s24 = int_to_ptr.vmem [resolvable:$true] %s35_s24 }
  0x15   :  { %p173_p9 = scmp.lt.u32.totalorder %s169_s27, %s276_s1 }
  0x17   :  { %p175_p10 = pnand %p173_p9, %p170_p8 }
  0x19   :  { %178 = shalt.err (!%p175_p10)
}
  0x1a   :  { %s179_s4 = scalar_lea.vmem %s36_s24, 256  ;;  %p184_p12 = scmp.lt.s32.totalorder %s36_s24, %s36_s24 }
  0x1b   :  { %p180_p11 = scmp.ne.s32.totalorder %s36_s24, %s179_s4  ;;  %p185_p13 = scmp.lt.s32.totalorder %s179_s4, %s179_s4 }
  0x1d   :  { %p186_p0 = por %p185_p13, %p184_p12 }
  0x1f   :  { %p187_p1 = pnand %p186_p0, %p180_p11 }
  0x21   :  { %190 = shalt.err (!%p187_p1)
}
  0x22   :  { %41 = dma.hbm_to_vmem [thread:$0]  %s276_s1, 256, %s36_s24, [#allocation6], %s220_s19, %s220_s19, %s221_s20  }
  0x23   :  { %213 = dma.done.wait [#allocation3], 256  }
  0x24   :  { %214 = vsyncadd [#allocation3], 4294967040 }
  0x25   :  { %215 = dma.done.wait [#allocation6], 256  }
  0x26   :  { %216 = vsyncadd [#allocation6], 4294967040  ;;  %v57_v0 = vld [vmem:[#allocation2] sm:$0xff]  ;;  %v58_v1 = vld [vmem:[#allocation2 + $0x8] sm:$0xff]  ;;  %s223_s1 = smov [#allocation7]  }
  0x27   :  { %v61_v2 = vand.u32 2147483647, %v57_v0  ;;  %v62_v3 = vand.u32 2147483647, %v58_v1  ;;  %v59_v12 = vld [vmem:[#allocation5] sm:$0xff]  ;;  %v60_v13 = vld [vmem:[#allocation5 + $0x8] sm:$0xff] }
  0x28   :  { %v79_v14 = vmax.f32 %v57_v0, 0.0  ;;  %v81_v15 = vmul.f32 %v59_v12, %v57_v0  ;;  %v80_v16 = vmax.f32 %v58_v1, 0.0  ;;  %v82_v17 = vmul.f32 %v60_v13, %v58_v1  ;;  %s119_s6 = sshll.u32 %s223_s1, 4  ;;  %s120_s6 = int_to_ptr.vmem [resolvable:$true] %s119_s6 }
  0x29   :  { %v63_v4 = vsub.f32 0.0, %v61_v2  ;;  %v64_v5 = vsub.f32 0.0, %v62_v3  ;;  %v101_v18 = vmul.f32 -0.5, %v59_v12  ;;  %vm73_vm0 = vcmp.ge.f32.partialorder %v57_v0, 0.0  ;;  %s191_s7 = scalar_lea.vmem %s120_s6, 128  ;;  %p196_p3 = scmp.lt.s32.totalorder %s120_s6, %s120_s6 }
  0x2a   :  { %vm74_vm1 = vcmp.ge.f32.partialorder %v58_v1, 0.0  ;;  %v83_v22 = vsub.f32 %v79_v14, %v81_v15  ;;  %v102_v23 = vmul.f32 -0.5, %v60_v13  ;;  %v84_v26 = vsub.f32 %v80_v16, %v82_v17  ;;  %p192_p2 = scmp.ne.s32.totalorder %s120_s6, %s191_s7  ;;  %p197_p4 = scmp.lt.s32.totalorder %s191_s7, %s191_s7 }
  0x2b   :  { %v65_v6 = vmul.f32 1.442695, %v63_v4  ;;  %v67_v7 = vmul.f32 1.442695, %v64_v5  ;;  %v103_v30 = vadd.f32 0.75, %v101_v18 }
  0x2c   :  { %v104_v38 = vadd.f32 0.75, %v102_v23  ;;  %p198_p5 = por %p197_p4, %p196_p3 }
  0x2d   :  { %135 = vpow2.f32 %v65_v6 }
  0x2e   :  { %137 = vpow2.f32 %v67_v7  ;;  %p199_p6 = pnand %p198_p5, %p192_p2 }
  0x37   :  { %v136_v8 = vpop.eup %135 }
  0x38   :  { %v138_v9 = vpop.eup %137  ;;  %v69_v10 = vadd.f32 1.0, %v136_v8 }
  0x39   :  { %v70_v11 = vadd.f32 1.0, %v138_v9 }
  0x3a   :  { %139 = vrcp.f32 %v69_v10 }
  0x3b   :  { %141 = vrcp.f32 %v70_v11 }
  0x3c   :  { %143 = vlog2.f32 %v69_v10 }
  0x3d   :  { %145 = vlog2.f32 %v70_v11 }
  0x44   :  { %v140_v19 = vpop.eup %139 }
  0x45   :  { %v142_v20 = vpop.eup %141  ;;  %v75_v21 = vmul.f32 %v140_v19, %v136_v8 }
  0x46   :  { %v144_v24 = vpop.eup %143  ;;  %v76_v25 = vmul.f32 %v142_v20, %v138_v9 }
  0x47   :  { %v146_v27 = vpop.eup %145  ;;  %v77_v28 = vsel %vm73_vm0, %v140_v19, %v75_v21  ;;  %v86_v29 = vmul.f32 0.6931472, %v144_v24 }
  0x48   :  { %v78_v31 = vsel %vm74_vm1, %v142_v20, %v76_v25  ;;  %v88_v32 = vmul.f32 0.6931472, %v146_v27  ;;  %v91_v33 = vadd.f32 %v77_v28, %v59_v12  ;;  %v93_v34 = vmul.f32 %v77_v28, %v59_v12 }
  0x49   :  { %v89_v35 = vadd.f32 %v86_v29, %v83_v22  ;;  %v92_v36 = vadd.f32 %v78_v31, %v60_v13  ;;  %v94_v37 = vmul.f32 %v78_v31, %v60_v13 }
  0x4a   :  { %v90_v39 = vadd.f32 %v88_v32, %v84_v26  ;;  %v95_v40 = vmul.f32 2.0, %v93_v34 }
  0x4b   :  { %v96_v41 = vmul.f32 2.0, %v94_v37  ;;  %v105_v43 = vmul.f32 %v103_v30, %v89_v35 }
  0x4c   :  { %v97_v42 = vsub.f32 %v91_v33, %v95_v40  ;;  %v106_v45 = vmul.f32 %v104_v38, %v90_v39 }
  0x4d   :  { %v98_v44 = vsub.f32 %v92_v36, %v96_v41 }
  0x4e   :  { %v99_v46 = vmul.f32 %v97_v42, %v97_v42 }
  0x4f   :  { %v100_v47 = vmul.f32 %v98_v44, %v98_v44 }
  0x50   :  { %v107_v48 = vmul.f32 %v105_v43, %v99_v46 }
  0x51   :  { %v108_v49 = vmul.f32 %v106_v45, %v100_v47 }
  0x53   :  { %v110_v50 = vadd.f32 %v108_v49, %v107_v48 }
  0x55   :  { %112 = vst [vmem:[#allocation7] sm:$0xff] %v110_v50 }
  0x56   :  { %202 = shalt.err (!%p199_p6)
}
  0x57   :  { %s203_s10 = scalar_lea.hbm %s277_s2, 128 }
  0x58   :  { %p204_p7 = scmp.ne.s32.totalorder %s277_s2, %s203_s10  ;;  %p207_p8 = scmp.lt.u32.totalorder %s203_s10, %s277_s2 }
  0x5a   :  { %p209_p9 = pnand %p207_p8, %p204_p7 }
  0x5c   :  { %212 = shalt.err (!%p209_p9)
}
  0x5d   :  { %122 = dma.vmem_to_hbm [thread:$0]  %s120_s6, 128, %s277_s2, [#allocation4]  }
  0x5e   :  { %217 = dma.done.wait [#allocation4], 128  }
  0x5f   :  { %218 = vsyncadd [#allocation4], 4294967168 }
  0x60   :  { %126 = vsyncpa [#allocation3], 1 }
  0x61   :  { %127 = vsyncpa [#allocation6], 1 }
  0x62   :  { %128 = vsyncpa [#allocation4], 1 }

</bundles_post_ra>
